<compile_context>
chip_gen: v6e
topology: v6e:2x2x1
jax: 0.10.0
libtpu: 0.0.40
codegen_flags: <defaults>
</compile_context>

<pallas_src>
import functools

import jax
import jax.numpy as jnp
from jax.experimental import pallas as pl
from jax.experimental.pallas import tpu as pltpu

_LANE = 128
_F32 = 4  # bytes


def _attention_kernel(x_ref, w_ref, b_ref, o_ref, *, bt, s, hp, kv_chunk,
                      attn_dtype):
    """Self-attention over a tile of `bt` batch elements.

    x_ref: (bt, S, D)   input tile
    w_ref: (D, 3*Hp)    fused [Wq/scale | Wk | Wv]  (H zero-padded to Hp)
    b_ref: (1, 3*Hp)    fused [bq/scale | bk | bv]
    o_ref: (bt, S, Hp)  output tile (padded hidden dim, lane dense)
    """
    # Single fused projection matmul with bt*S sublane rows on the MXU.
    x2 = x_ref[...].reshape(bt * s, -1)                          # (bt*S, D)
    proj = jnp.dot(x2, w_ref[...], preferred_element_type=jnp.float32)
    proj = proj + b_ref[...]                                     # (bt*S, 3*Hp)

    # Lane-aligned slices (Hp % 128 == 0); 1/sqrt(H) already folded into Q.
    q = proj[:, 0 * hp:1 * hp].reshape(bt, s, hp).astype(attn_dtype)
    k = proj[:, 1 * hp:2 * hp].reshape(bt, s, hp).astype(attn_dtype)
    v = proj[:, 2 * hp:3 * hp].reshape(bt, s, hp).astype(attn_dtype)

    # KV-chunked online softmax (flash style).  One chunk == dense softmax.
    n_chunks = s // kv_chunk
    m = jnp.full((bt, s, 1), -jnp.inf, jnp.float32)
    l = jnp.zeros((bt, s, 1), jnp.float32)
    acc = jnp.zeros((bt, s, hp), jnp.float32)
    for c in range(n_chunks):                    # static unroll (n_chunks small)
        k_c = k[:, c * kv_chunk:(c + 1) * kv_chunk, :]
        v_c = v[:, c * kv_chunk:(c + 1) * kv_chunk, :]
        # Batched Q K^T: contract last dims directly — no explicit K transpose.
        scores = jnp.einsum("bqd,bkd->bqk", q, k_c,
                            preferred_element_type=jnp.float32)  # (bt, S, Tk)
        m_new = jnp.maximum(m, jnp.max(scores, axis=-1, keepdims=True))
        alpha = jnp.exp(m - m_new)
        e = jnp.exp(scores - m_new)              # f32 exp path (v5e-safe)
        l = alpha * l + jnp.sum(e, axis=-1, keepdims=True)
        acc = alpha * acc + jnp.einsum("bqk,bkd->bqd", e.astype(attn_dtype),
                                       v_c, preferred_element_type=jnp.float32)
        m = m_new

    # Deferred normalization: exact reciprocal of the (bt,S,1) denominator,
    # then one (bt,S,Hp) multiply — no (bt,S,S) normalization pass.
    out = acc * pl.reciprocal(l)
    o_ref[...] = out.astype(o_ref.dtype)


def _round_up(x, m):
    return -(-x // m) * m


def _choose_kv_chunk(s):
    """Whole S when small; otherwise the largest divisor of S near 512."""
    if s <= 512:
        return s
    for c in range(512, 127, -1):
        if s % c == 0:
            return c
    # TODO(synk): masked ragged last KV chunk for awkward (prime-ish) S.
    return s


def _est_vmem_bytes(bt, s, d, hp, kv_chunk, itemsize):
    """Rough per-step VMEM working-set estimate (bytes)."""
    x_tile = 2 * bt * s * d * itemsize              # double-buffered input
    o_tile = 2 * bt * s * hp * itemsize             # double-buffered output
    w = (d + 1) * 3 * hp * itemsize                 # single-buffered fused W/b
    proj = bt * s * 3 * hp * _F32
    qkv = 3 * bt * s * hp * _F32
    chunk = 2 * bt * s * kv_chunk * _F32            # scores + e
    accum = bt * s * hp * _F32 + 2 * bt * s * _F32  # acc + m/l
    return x_tile + o_tile + w + proj + qkv + chunk + accum


def _choose_bt(b, s, d, hp, kv_chunk, itemsize, budget=24 << 20):
    """Largest divisor of B meeting an MXU-row target and the VMEM budget."""
    divisors = [i for i in range(1, b + 1) if b % i == 0]
    row_target = max(1, 512 // s)                   # ~512 MXU rows per step
    bt = 1
    for dv in divisors:
        if dv <= row_target and _est_vmem_bytes(dv, s, d, hp, kv_chunk,
                                                itemsize) <= budget:
            bt = max(bt, dv)
    # v7x has 2 TensorCores: for big, compute-heavy problems keep >= 2 grid
    # steps so the "parallel" axis can shard across both cores.
    if bt == b and b > 1 and b * s >= 1024:
        bt = max(dv for dv in divisors if dv < b)
    return bt


def attention_pallas(x, wq, bq, wk, bk, wv, bv, *,
                     attn_matmul_dtype=jnp.bfloat16, kv_chunk=None):
    """x: (B, S, D); w*: (D, H); b*: (1, H)  ->  (B, S, H)."""
    B, S, D = x.shape
    H = wq.shape[1]
    scale = float(H) ** 0.5

    # ---- wrapper-side parameter prep (one-time, outside the kernel) --------
    # Zero-pad hidden dim to Hp (multiple of 128 lanes): unmasked stores and
    # vreg-aligned Q/K/V slices.  Padding is exact (padded Q/K cols are 0 so
    # scores are unchanged; padded V cols give 0 output cols, sliced off).
    Hp = _round_up(max(H, _LANE), _LANE)

    def pad_h(w, b):
        wp = jnp.zeros((D, Hp), w.dtype).at[:, :H].set(w)
        bp = jnp.zeros((1, Hp), b.dtype).at[:, :H].set(b)
        return wp, bp

    wq_p, bq_p = pad_h(wq, bq)
    wk_p, bk_p = pad_h(wk, bk)
    wv_p, bv_p = pad_h(wv, bv)

    inv_scale = jnp.asarray(1.0 / scale, wq_p.dtype)
    wq_p = wq_p * inv_scale                         # fold 1/sqrt(H) into Q
    bq_p = bq_p * inv_scale

    w_fused = jnp.concatenate([wq_p, wk_p, wv_p], axis=1)       # (D, 3*Hp)
    b_fused = jnp.concatenate([bq_p, bk_p, bv_p], axis=1)       # (1, 3*Hp)

    # ---- tiling / budgets ---------------------------------------------------
    itemsize = jnp.dtype(x.dtype).itemsize
    if kv_chunk is None:
        kv_chunk = _choose_kv_chunk(S)
    assert S % kv_chunk == 0, "kv_chunk must divide S"
    bt = _choose_bt(B, S, D, Hp, kv_chunk, itemsize)
    num_tiles = B // bt                              # exact: no batch padding

    est = _est_vmem_bytes(bt, S, D, Hp, kv_chunk, itemsize)
    vmem_limit = int(max(32 << 20, min(48 << 20, 2 * est)))
    # TODO(synk): derive budget/limit per generation via pltpu.get_tpu_info().

    kernel = functools.partial(_attention_kernel, bt=bt, s=S, hp=Hp,
                               kv_chunk=kv_chunk, attn_dtype=attn_matmul_dtype)

    cost = pl.CostEstimate(
        flops=2 * B * S * D * (3 * Hp) + 4 * B * S * S * Hp,
        transcendentals=B * S * S,
        bytes_accessed=(B * S * D + (D + 1) * 3 * Hp + B * S * Hp) * itemsize,
    )

    def build(single_buffer_weights):
        w_kw = ({"pipeline_mode": pl.Buffered(1)}
                if single_buffer_weights else {})
        return pl.pallas_call(
            kernel,
            out_shape=jax.ShapeDtypeStruct((B, S, Hp), x.dtype),
            grid_spec=pltpu.PrefetchScalarGridSpec(
                num_scalar_prefetch=0,
                grid=(num_tiles,),
                in_specs=[
                    pl.BlockSpec((bt, S, D), lambda g: (g, 0, 0)),         # x
                    pl.BlockSpec((D, 3 * Hp), lambda g: (0, 0), **w_kw),   # W
                    pl.BlockSpec((1, 3 * Hp), lambda g: (0, 0), **w_kw),   # b
                ],
                out_specs=pl.BlockSpec((bt, S, Hp), lambda g: (g, 0, 0)),
            ),
            compiler_params=pltpu.CompilerParams(
                dimension_semantics=("parallel",),
                vmem_limit_bytes=vmem_limit),
            cost_estimate=cost,
        )

    try:
        out = build(single_buffer_weights=True)(x, w_fused, b_fused)
    except Exception:
        # Fallback for jax versions without BlockSpec pipeline_mode support:
        # default double-buffered weights (slightly more VMEM, same results).
        out = build(single_buffer_weights=False)(x, w_fused, b_fused)

    # Strip hidden-dim padding.  TODO(synk): return the Hp-padded layout (or
    # fuse the consumer) to avoid this extra HBM copy when H << 128.
    return out if H == Hp else out[:, :, :H]


def attention_reference(x, wq, bq, wk, bk, wv, bv):
    """Pure-JAX reference mirroring the PyTorch forward."""
    H = wq.shape[1]
    scale = float(H) ** 0.5
    q = x @ wq + bq[0]
    k = x @ wk + bk[0]
    v = x @ wv + bv[0]
    scores = jnp.einsum("bsh,bth->bst", q, k) / scale
    p = jax.nn.softmax(scores, axis=-1)
    return jnp.einsum("bst,bth->bsh", p, v)


if __name__ == "__main__":
    # Small shapes consistent with the module: input_dim=16, hidden_dim=32.
    B, S, D, H = 2, 8, 16, 32

    key = jax.random.PRNGKey(0)
    kx, kq, kbq, kk, kbk, kv, kbv = jax.random.split(key, 7)

    x = jax.random.normal(kx, (B, S, D), dtype=jnp.float32)

    # Deterministic nn.Linear-style init (uniform bound 1/sqrt(D)).
    bound = 1.0 / (D ** 0.5)
    wq = jax.random.uniform(kq, (D, H), jnp.float32, -bound, bound)
    bq = jax.random.uniform(kbq, (1, H), jnp.float32, -bound, bound)
    wk = jax.random.uniform(kk, (D, H), jnp.float32, -bound, bound)
    bk = jax.random.uniform(kbk, (1, H), jnp.float32, -bound, bound)
    wv = jax.random.uniform(kv, (D, H), jnp.float32, -bound, bound)
    bv = jax.random.uniform(kbv, (1, H), jnp.float32, -bound, bound)

    ref = attention_reference(x, wq, bq, wk, bk, wv, bv)

    # Exact path: f32 matmuls + deferred exact normalization -> tight tol.
    out_f32 = attention_pallas(x, wq, bq, wk, bk, wv, bv,
                               attn_matmul_dtype=jnp.float32)
    out_f32 = jax.block_until_ready(out_f32)
    assert out_f32.shape == (B, S, H)
    assert jnp.allclose(out_f32, ref, atol=1e-5, rtol=1e-5), "f32 mismatch"

    # Exercise the KV-chunked (flash-style) path with a forced small chunk.
    out_chunked = attention_pallas(x, wq, bq, wk, bk, wv, bv,
                                   attn_matmul_dtype=jnp.float32, kv_chunk=4)
    out_chunked = jax.block_until_ready(out_chunked)
    assert jnp.allclose(out_chunked, ref, atol=1e-5, rtol=1e-5), \
        "flash-path mismatch"

    # Default fast path: bf16 MXU matmuls (f32 accumulation / softmax).
    out_bf16 = attention_pallas(x, wq, bq, wk, bk, wv, bv)
    out_bf16 = jax.block_until_ready(out_bf16)
    assert out_bf16.shape == (B, S, H)
    assert jnp.allclose(out_bf16, ref, atol=2e-2, rtol=2e-2), "bf16 mismatch"

    print("KERNEL_OK")
</pallas_src>

<mosaic_0001>
module attributes {stable_mosaic.version = 11 : i64} {
  func.func @_attention_kernel(%arg0: i32, %arg1: memref<2x8x16xf32, #tpu.memory_space<vmem>>, %arg2: memref<16x384xf32, #tpu.memory_space<vmem>>, %arg3: memref<1x384xf32, #tpu.memory_space<vmem>>, %arg4: memref<2x8x128xf32, #tpu.memory_space<vmem>>) attributes {dimension_semantics = [#tpu.dimension_semantics<parallel>], iteration_bounds = array<i64: 1>, scalar_prefetch = 0 : i64, scratch_operands = 0 : i64, tpu.core_type = #tpu.core_type<tc>, window_params = [{transform_indices = @transform_0, window_bounds = array<i64: 2, 8, 16>}, {pipeline_mode = #tpu.pipeline_mode<synchronous>, transform_indices = @transform_1, window_bounds = array<i64: 16, 384>}, {pipeline_mode = #tpu.pipeline_mode<synchronous>, transform_indices = @transform_2, window_bounds = array<i64: 1, 384>}, {transform_indices = @transform_3, window_bounds = array<i64: 2, 8, 128>}]} {
    %c0 = arith.constant 0 : index
    %c0_0 = arith.constant 0 : index
    %c0_1 = arith.constant 0 : index
    %0 = vector.load %arg1[%c0, %c0_0, %c0_1] : memref<2x8x16xf32, #tpu.memory_space<vmem>>, vector<2x8x16xf32>
    %1 = vector.shape_cast %0 : vector<2x8x16xf32> to vector<16x16xf32>
    %c0_2 = arith.constant 0 : index
    %c0_3 = arith.constant 0 : index
    %2 = vector.load %arg2[%c0_2, %c0_3] : memref<16x384xf32, #tpu.memory_space<vmem>>, vector<16x384xf32>
    %cst = arith.constant dense<0.000000e+00> : vector<16x384xf32>
    %3 = tpu.matmul %1, %2, %cst {dimension_numbers = #tpu.dot_dimension_numbers<[1], [0], [0], [1], [0, 0, 1, 1], [], []>} : vector<16x16xf32>, vector<16x384xf32>, vector<16x384xf32> -> vector<16x384xf32>
    %c0_4 = arith.constant 0 : index
    %c0_5 = arith.constant 0 : index
    %4 = vector.load %arg3[%c0_4, %c0_5] : memref<1x384xf32, #tpu.memory_space<vmem>>, vector<1x384xf32>
    %5 = vector.broadcast %4 : vector<1x384xf32> to vector<16x384xf32>
    %6 = arith.addf %3, %5 : vector<16x384xf32>
    %7 = vector.extract_strided_slice %6 {offsets = [0, 0], sizes = [16, 128], strides = [1, 1]} : vector<16x384xf32> to vector<16x128xf32>
    %8 = vector.shape_cast %7 : vector<16x128xf32> to vector<2x8x128xf32>
    %9 = vector.extract_strided_slice %6 {offsets = [0, 128], sizes = [16, 128], strides = [1, 1]} : vector<16x384xf32> to vector<16x128xf32>
    %10 = vector.shape_cast %9 : vector<16x128xf32> to vector<2x8x128xf32>
    %11 = vector.extract_strided_slice %6 {offsets = [0, 256], sizes = [16, 128], strides = [1, 1]} : vector<16x384xf32> to vector<16x128xf32>
    %12 = vector.shape_cast %11 : vector<16x128xf32> to vector<2x8x128xf32>
    %cst_6 = arith.constant 0xFF800000 : f32
    %13 = vector.broadcast %cst_6 : f32 to vector<2x8x1xf32>
    %cst_7 = arith.constant 0.000000e+00 : f32
    %14 = vector.broadcast %cst_7 : f32 to vector<2x8x1xf32>
    %cst_8 = arith.constant 0.000000e+00 : f32
    %15 = vector.broadcast %cst_8 : f32 to vector<2x8x128xf32>
    "tpu.trace_start"() <{level = 10 : i32, message = "bqd,bkd->bqk"}> : () -> ()
    %cst_9 = arith.constant dense<0.000000e+00> : vector<2x8x8xf32>
    %16 = tpu.matmul %8, %10, %cst_9 {dimension_numbers = #tpu.dot_dimension_numbers<[2], [2], [1], [1], [0, 0, 0, 1, 1, 1], [0], [0]>} : vector<2x8x128xf32>, vector<2x8x128xf32>, vector<2x8x8xf32> -> vector<2x8x8xf32>
    "tpu.trace_stop"() : () -> ()
    %cst_10 = arith.constant dense<0xFF800000> : vector<2x8xf32>
    %17 = vector.multi_reduction <maximumf>, %16, %cst_10 [2] : vector<2x8x8xf32> to vector<2x8xf32>
    %18 = vector.shape_cast %17 : vector<2x8xf32> to vector<2x8x1xf32>
    %19 = arith.maximumf %13, %18 : vector<2x8x1xf32>
    %20 = arith.subf %13, %19 : vector<2x8x1xf32>
    %21 = math.exp %20 : vector<2x8x1xf32>
    %22 = vector.broadcast %19 : vector<2x8x1xf32> to vector<2x8x8xf32>
    %23 = arith.subf %16, %22 : vector<2x8x8xf32>
    %24 = math.exp %23 : vector<2x8x8xf32>
    %25 = arith.mulf %21, %14 : vector<2x8x1xf32>
    %cst_11 = arith.constant dense<0.000000e+00> : vector<2x8xf32>
    %26 = vector.multi_reduction <add>, %24, %cst_11 [2] : vector<2x8x8xf32> to vector<2x8xf32>
    %27 = vector.shape_cast %26 : vector<2x8xf32> to vector<2x8x1xf32>
    %28 = arith.addf %25, %27 : vector<2x8x1xf32>
    %29 = vector.broadcast %21 : vector<2x8x1xf32> to vector<2x8x128xf32>
    %30 = arith.mulf %29, %15 : vector<2x8x128xf32>
    "tpu.trace_start"() <{level = 10 : i32, message = "bqk,bkd->bqd"}> : () -> ()
    %cst_12 = arith.constant dense<0.000000e+00> : vector<2x8x128xf32>
    %31 = tpu.matmul %24, %12, %cst_12 {dimension_numbers = #tpu.dot_dimension_numbers<[2], [1], [1], [2], [0, 0, 0, 1, 1, 2], [0], [0]>} : vector<2x8x8xf32>, vector<2x8x128xf32>, vector<2x8x128xf32> -> vector<2x8x128xf32>
    "tpu.trace_stop"() : () -> ()
    %32 = arith.addf %30, %31 : vector<2x8x128xf32>
    %33 = tpu.reciprocal %28 : vector<2x8x1xf32> -> vector<2x8x1xf32>
    %34 = vector.broadcast %33 : vector<2x8x1xf32> to vector<2x8x128xf32>
    %35 = arith.mulf %32, %34 : vector<2x8x128xf32>
    %c0_13 = arith.constant 0 : index
    %c0_14 = arith.constant 0 : index
    %c0_15 = arith.constant 0 : index
    %36 = vector.load %arg4[%c0_13, %c0_14, %c0_15] : memref<2x8x128xf32, #tpu.memory_space<vmem>>, vector<2x8x128xf32>
    tpu.vector_store %arg4[%c0_13, %c0_14, %c0_15], %35 {strides = array<i32>} : memref<2x8x128xf32, #tpu.memory_space<vmem>>, vector<2x8x128xf32>,
    return
  }
  func.func @transform_0(%arg0: i32) -> (i32, i32, i32) {
    %c0_i32 = arith.constant 0 : i32
    %c0_i32_0 = arith.constant 0 : i32
    %c0_i32_1 = arith.constant 0 : i32
    return %arg0, %c0_i32, %c0_i32_0 : i32, i32, i32
  }
  func.func @transform_1(%arg0: i32) -> (i32, i32) {
    %c0_i32 = arith.constant 0 : i32
    %c0_i32_0 = arith.constant 0 : i32
    %c0_i32_1 = arith.constant 0 : i32
    return %c0_i32, %c0_i32_0 : i32, i32
  }
  func.func @transform_2(%arg0: i32) -> (i32, i32) {
    %c0_i32 = arith.constant 0 : i32
    %c0_i32_0 = arith.constant 0 : i32
    %c0_i32_1 = arith.constant 0 : i32
    return %c0_i32, %c0_i32_0 : i32, i32
  }
  func.func @transform_3(%arg0: i32) -> (i32, i32, i32) {
    %c0_i32 = arith.constant 0 : i32
    %c0_i32_0 = arith.constant 0 : i32
    %c0_i32_1 = arith.constant 0 : i32
    return %arg0, %c0_i32, %c0_i32_0 : i32, i32, i32
  }
}

module attributes {stable_mosaic.version = 11 : i64} {
  func.func @_attention_kernel(%arg0: i32, %arg1: memref<2x8x16xf32, #tpu.memory_space<vmem>>, %arg2: memref<16x384xf32, #tpu.memory_space<vmem>>, %arg3: memref<1x384xf32, #tpu.memory_space<vmem>>, %arg4: memref<2x8x128xf32, #tpu.memory_space<vmem>>) attributes {dimension_semantics = [#tpu.dimension_semantics<parallel>], iteration_bounds = array<i64: 1>, scalar_prefetch = 0 : i64, scratch_operands = 0 : i64, tpu.core_type = #tpu.core_type<tc>, window_params = [{transform_indices = @transform_0, window_bounds = array<i64: 2, 8, 16>}, {pipeline_mode = #tpu.pipeline_mode<synchronous>, transform_indices = @transform_1, window_bounds = array<i64: 16, 384>}, {pipeline_mode = #tpu.pipeline_mode<synchronous>, transform_indices = @transform_2, window_bounds = array<i64: 1, 384>}, {transform_indices = @transform_3, window_bounds = array<i64: 2, 8, 128>}]} {
    %c0 = arith.constant 0 : index
    %c0_0 = arith.constant 0 : index
    %c0_1 = arith.constant 0 : index
    %0 = vector.load %arg1[%c0, %c0_0, %c0_1] : memref<2x8x16xf32, #tpu.memory_space<vmem>>, vector<2x8x16xf32>
    %1 = vector.shape_cast %0 : vector<2x8x16xf32> to vector<16x16xf32>
    %c0_2 = arith.constant 0 : index
    %c0_3 = arith.constant 0 : index
    %2 = vector.load %arg2[%c0_2, %c0_3] : memref<16x384xf32, #tpu.memory_space<vmem>>, vector<16x384xf32>
    %cst = arith.constant dense<0.000000e+00> : vector<16x384xf32>
    %3 = tpu.matmul %1, %2, %cst {dimension_numbers = #tpu.dot_dimension_numbers<[1], [0], [0], [1], [0, 0, 1, 1], [], []>} : vector<16x16xf32>, vector<16x384xf32>, vector<16x384xf32> -> vector<16x384xf32>
    %c0_4 = arith.constant 0 : index
    %c0_5 = arith.constant 0 : index
    %4 = vector.load %arg3[%c0_4, %c0_5] : memref<1x384xf32, #tpu.memory_space<vmem>>, vector<1x384xf32>
    %5 = vector.broadcast %4 : vector<1x384xf32> to vector<16x384xf32>
    %6 = arith.addf %3, %5 : vector<16x384xf32>
    %7 = vector.extract_strided_slice %6 {offsets = [0, 0], sizes = [16, 128], strides = [1, 1]} : vector<16x384xf32> to vector<16x128xf32>
    %8 = vector.shape_cast %7 : vector<16x128xf32> to vector<2x8x128xf32>
    %9 = vector.extract_strided_slice %6 {offsets = [0, 128], sizes = [16, 128], strides = [1, 1]} : vector<16x384xf32> to vector<16x128xf32>
    %10 = vector.shape_cast %9 : vector<16x128xf32> to vector<2x8x128xf32>
    %11 = vector.extract_strided_slice %6 {offsets = [0, 256], sizes = [16, 128], strides = [1, 1]} : vector<16x384xf32> to vector<16x128xf32>
    %12 = vector.shape_cast %11 : vector<16x128xf32> to vector<2x8x128xf32>
    %cst_6 = arith.constant 0xFF800000 : f32
    %13 = vector.broadcast %cst_6 : f32 to vector<2x8x1xf32>
    %cst_7 = arith.constant 0.000000e+00 : f32
    %14 = vector.broadcast %cst_7 : f32 to vector<2x8x1xf32>
    %cst_8 = arith.constant 0.000000e+00 : f32
    %15 = vector.broadcast %cst_8 : f32 to vector<2x8x128xf32>
    "tpu.trace_start"() <{level = 10 : i32, message = "bqd,bkd->bqk"}> : () -> ()
    %cst_9 = arith.constant dense<0.000000e+00> : vector<2x8x8xf32>
    %16 = tpu.matmul %8, %10, %cst_9 {dimension_numbers = #tpu.dot_dimension_numbers<[2], [2], [1], [1], [0, 0, 0, 1, 1, 1], [0], [0]>} : vector<2x8x128xf32>, vector<2x8x128xf32>, vector<2x8x8xf32> -> vector<2x8x8xf32>
    "tpu.trace_stop"() : () -> ()
    %cst_10 = arith.constant dense<0xFF800000> : vector<2x8xf32>
    %17 = vector.multi_reduction <maximumf>, %16, %cst_10 [2] : vector<2x8x8xf32> to vector<2x8xf32>
    %18 = vector.shape_cast %17 : vector<2x8xf32> to vector<2x8x1xf32>
    %19 = arith.maximumf %13, %18 : vector<2x8x1xf32>
    %20 = arith.subf %13, %19 : vector<2x8x1xf32>
    %21 = math.exp %20 : vector<2x8x1xf32>
    %22 = vector.broadcast %19 : vector<2x8x1xf32> to vector<2x8x8xf32>
    %23 = arith.subf %16, %22 : vector<2x8x8xf32>
    %24 = math.exp %23 : vector<2x8x8xf32>
    %25 = arith.mulf %21, %14 : vector<2x8x1xf32>
    %cst_11 = arith.constant dense<0.000000e+00> : vector<2x8xf32>
    %26 = vector.multi_reduction <add>, %24, %cst_11 [2] : vector<2x8x8xf32> to vector<2x8xf32>
    %27 = vector.shape_cast %26 : vector<2x8xf32> to vector<2x8x1xf32>
    %28 = arith.addf %25, %27 : vector<2x8x1xf32>
    %29 = vector.broadcast %21 : vector<2x8x1xf32> to vector<2x8x128xf32>
    %30 = arith.mulf %29, %15 : vector<2x8x128xf32>
    "tpu.trace_start"() <{level = 10 : i32, message = "bqk,bkd->bqd"}> : () -> ()
    %cst_12 = arith.constant dense<0.000000e+00> : vector<2x8x128xf32>
    %31 = tpu.matmul %24, %12, %cst_12 {dimension_numbers = #tpu.dot_dimension_numbers<[2], [1], [1], [2], [0, 0, 0, 1, 1, 2], [0], [0]>} : vector<2x8x8xf32>, vector<2x8x128xf32>, vector<2x8x128xf32> -> vector<2x8x128xf32>
    "tpu.trace_stop"() : () -> ()
    %32 = arith.addf %30, %31 : vector<2x8x128xf32>
    %33 = tpu.reciprocal %28 : vector<2x8x1xf32> -> vector<2x8x1xf32>
    %34 = vector.broadcast %33 : vector<2x8x1xf32> to vector<2x8x128xf32>
    %35 = arith.mulf %32, %34 : vector<2x8x128xf32>
    %c0_13 = arith.constant 0 : index
    %c0_14 = arith.constant 0 : index
    %c0_15 = arith.constant 0 : index
    %36 = vector.load %arg4[%c0_13, %c0_14, %c0_15] : memref<2x8x128xf32, #tpu.memory_space<vmem>>, vector<2x8x128xf32>
    tpu.vector_store %arg4[%c0_13, %c0_14, %c0_15], %35 {strides = array<i32>} : memref<2x8x128xf32, #tpu.memory_space<vmem>>, vector<2x8x128xf32>,
    return
  }
  func.func @transform_0(%arg0: i32) -> (i32, i32, i32) {
    %c0_i32 = arith.constant 0 : i32
    %c0_i32_0 = arith.constant 0 : i32
    %c0_i32_1 = arith.constant 0 : i32
    return %arg0, %c0_i32, %c0_i32_0 : i32, i32, i32
  }
  func.func @transform_1(%arg0: i32) -> (i32, i32) {
    %c0_i32 = arith.constant 0 : i32
    %c0_i32_0 = arith.constant 0 : i32
    %c0_i32_1 = arith.constant 0 : i32
    return %c0_i32, %c0_i32_0 : i32, i32
  }
  func.func @transform_2(%arg0: i32) -> (i32, i32) {
    %c0_i32 = arith.constant 0 : i32
    %c0_i32_0 = arith.constant 0 : i32
    %c0_i32_1 = arith.constant 0 : i32
    return %c0_i32, %c0_i32_0 : i32, i32
  }
  func.func @transform_3(%arg0: i32) -> (i32, i32, i32) {
    %c0_i32 = arith.constant 0 : i32
    %c0_i32_0 = arith.constant 0 : i32
    %c0_i32_1 = arith.constant 0 : i32
    return %arg0, %c0_i32, %c0_i32_0 : i32, i32, i32
  }
}

</mosaic_0001>

<bundles_post_ra>
// kernel: tpu_custom_call.1
= control target key start
LH: loop header
LB: loop body
LE: loop exit
PB: predicated region body
PF: predicated region fallthrough
CT: control target
= control target key end

     0   :  { %8 = vsyncpa [#allocation3], 0  ;;  %s761_s0 = inlined_call_operand.hbm [shape: f32[2,8,16], index: 0, kind: input, shape index: {}]   ;;  %s762_s1 = inlined_call_operand.hbm [shape: f32[16,384], index: 1, kind: input, shape index: {}]   ;;  %s763_s2 = inlined_call_operand.vmem [shape: f32[1,384], index: 2, kind: input, shape index: {}]   ;;  %s764_s3 = inlined_call_operand.hbm [shape: f32[2,8,128], index: 3, kind: output, shape index: {}]  }
   0x1   :  { %9 = vsyncpa [#allocation6], 0 }
   0x2   :  { %10 = vsyncpa [#allocation4], 0  ;;  %s700_s12 = smov [#allocation2]  }
   0x3   :  { %s16_s13 = sshll.u32 %s700_s12, 4  ;;  %s17_s13 = int_to_ptr.vmem [resolvable:$true] %s16_s13 }
   0x4   :  { %s642_s14 = scalar_lea.vmem %s17_s13, 256  ;;  %p647_p1 = scmp.lt.s32.totalorder %s17_s13, %s17_s13 }
   0x5   :  { %p643_p0 = scmp.ne.s32.totalorder %s17_s13, %s642_s14  ;;  %p648_p2 = scmp.lt.s32.totalorder %s642_s14, %s642_s14 }
   0x7   :  { %p649_p3 = por %p648_p2, %p647_p1 }
   0x9   :  { %p650_p4 = pnand %p649_p3, %p643_p0 }
   0xb   :  { %653 = shalt.err (!%p650_p4)
}
   0xc   :  { %s701_s15 = smov 128   ;;  %s702_s16 = smov 8  }
   0xd   :  { %22 = dma.hbm_to_vmem [thread:$0]  %s761_s0, 256, %s17_s13, [#allocation3], %s701_s15, %s701_s15, %s702_s16  }
   0xe   :  { %s703_s19 = smov [#allocation5]  }
   0xf   :  { %s28_s20 = sshll.u32 %s703_s19, 4  ;;  %s29_s20 = int_to_ptr.vmem [resolvable:$true] %s28_s20 }
  0x10   :  { %s662_s21 = scalar_lea.vmem %s29_s20, 768  ;;  %p667_p6 = scmp.lt.s32.totalorder %s29_s20, %s29_s20 }
  0x11   :  { %p663_p5 = scmp.ne.s32.totalorder %s29_s20, %s662_s21  ;;  %p668_p7 = scmp.lt.s32.totalorder %s662_s21, %s662_s21 }
  0x13   :  { %p669_p8 = por %p668_p7, %p667_p6 }
  0x15   :  { %p670_p9 = pnand %p669_p8, %p663_p5 }
  0x17   :  { %673 = shalt.err (!%p670_p9)
}
  0x18   :  { %s704_s22 = smov 384   ;;  %s705_s23 = smov 24  }
  0x19   :  { %34 = dma.hbm_to_vmem [thread:$0]  %s762_s1, 768, %s29_s20, [#allocation6], %s704_s22, %s704_s22, %s705_s23  }
  0x1a   :  { %694 = dma.done.wait [#allocation3], 256  }
  0x1b   :  { %695 = vsyncadd [#allocation3], 4294967040 }
  0x1c   :  { %696 = dma.done.wait [#allocation6], 768  }
  0x1d   :  { %697 = vsyncadd [#allocation6], 4294966528  ;;  %v706_v0 = vmov 0.0   ;;  %v49_v1 = vld [vmem:[#allocation5 + $0x20] sm:$0xff]  ;;  %v48_v2 = vld [vmem:[#allocation5 + $0x18] sm:$0xff]  ;;  %vm68_vm0 = vcmask 130048   ;;  %v53_v9 = vlaneseq }
  0x1e   :  { %139 = vmatprep.mubr.f32.mxu0 %v706_v0  ;;  %v46_v3 = vld [vmem:[#allocation5 + $0x8] sm:$0xff]  ;;  %103 = vmatprep.subr.mxu0 %v49_v1  ;;  %v45_v4 = vld [vmem:[#allocation5] sm:$0xff]  ;;  %v43_v5 = vld [vmem:[#allocation2] sm:$0xff]  ;;  %vm707_vm1 = vmmov 0   ;;  %vm367_vm2 = vcmask 64512  }
  0x1f   :  { %104 = vmatpush1.msra.mxu0 %v48_v2  ;;  %590 = vmatprep.mubr.msk.f32.mxu1 %vm68_vm0, %v43_v5  ;;  %v44_v6 = vld [vmem:[#allocation2 + $0x8] sm:$0xff]  ;;  %v50_v7 = vld [vmem:[#allocation5 + $0x28] sm:$0xff]  ;;  %v47_v8 = vld [vmem:[#allocation5 + $0x10] sm:$0xff]  ;;  %v54_v10 = vshrl.u32 %v53_v9, 7 }
  0x20   :  { %105 = vmatprep.subr.mxu0 %v46_v3  ;;  %586 = vmatprep.subr.mxu1 %v50_v7  ;;  %v51_v12 = vld [vmem:[%s763_s2] sm:$0x7]  ;;  %s708_s2 = smov [#allocation7]  }
  0x21   :  { %106 = vmatpush1.msra.mxu0 %v45_v4  ;;  %587 = vmatpush3.msra.mxu1 %v50_v7  ;;  %v63_v11 = vsub.s32 2, %v54_v10  ;;  %v59_v14 = vsub.s32 1, %v54_v10  ;;  %v55_v15 = vsub.s32 0, %v54_v10  ;;  %s555_s26 = sshll.u32 %s708_s2, 4  ;;  %s556_s26 = int_to_ptr.vmem [resolvable:$true] %s555_s26 }
  0x22   :  { %568 = vmatmul.mubr.msk.f32.vlgmr.msra.gmra.mxu0 %vm68_vm0, %v43_v5  ;;  %598 = vmatprep.subr.mxu0 %v706_v0  ;;  %s674_s27 = scalar_lea.vmem %s556_s26, 256  ;;  %p679_p11 = scmp.lt.s32.totalorder %s556_s26, %s556_s26 }
  0x23   :  { %145 = vmatprep.mubr.f32.mxu0 %v706_v0  ;;  %588 = vmatprep.subr.mxu1 %v47_v8  ;;  %v64_v13 = vrot.slane %v51_v12, %v63_v11  ;;  %v60_v16 = vrot.slane %v51_v12, %v59_v14  ;;  %v56_v18 = vrot.slane %v51_v12, %v55_v15  ;;  %p675_p10 = scmp.ne.s32.totalorder %s556_s26, %s674_s27  ;;  %p680_p12 = scmp.lt.s32.totalorder %s674_s27, %s674_s27 }
  0x24   :  { %589 = vmatpush3.msra.mxu1 %v47_v8 }
  0x25   :  { %591 = vmatmul.mubr.msk.f32.vlgmr.msra.gmra.mxu1 %vm68_vm0, %v44_v6  ;;  %593 = vmatprep.subr.mxu1 %v706_v0  ;;  %p681_p13 = por %p680_p12, %p679_p11 }
  0x26   :  { %569 = vmatmul.mubr.msk.f32.gmra.mxu0 %vm68_vm0, %v44_v6  ;;  %595 = vmatprep.mubr.msk.f32.mxu1 %vm707_vm1, %v706_v0 }
  0x27   :  { %600 = vmatprep.mubr.msk.f32.mxu0 %vm707_vm1, %v706_v0  ;;  %p682_p0 = pnand %p681_p13, %p675_p10 }
  0xe2   :  { %v141_v17 = vpop.f32.mrf.mxu0 }
  0xe3   :  { %v142_v22 = vadd.f32 %v141_v17, %v56_v18 }
  0xe4   :  { %v143_v19 = vpop.f32.mrf.mxu0 }
  0xe5   :  { %v144_v20 = vadd.f32 %v143_v19, %v60_v16  ;;  %v592_v26 = vpop.f32.mrf.mxu1 }
  0xe6   :  { %v147_v21 = vpop.f32.mrf.mxu0  ;;  %v224_v27 = vadd.f32 %v592_v26, %v64_v13 }
  0xe7   :  { %594 = vmatpush3.xpose.msra.mxu1 %v144_v20  ;;  %v148_v25 = vadd.f32 %v147_v21, %v56_v18  ;;  %v218_v28 = vpop.f32.mrf.mxu1 }
  0xe8   :  { %v149_v23 = vpop.f32.mrf.mxu0  ;;  %603 = vmatprep.subr.mxu1 %v706_v0  ;;  %v219_v29 = vadd.f32 %v218_v28, %v64_v13 }
  0xe9   :  { %v150_v24 = vadd.f32 %v149_v23, %v60_v16 }
  0xea   :  { %596 = vmatmul.mubr.f32.vlgmr.msra.gmra.mxu1 %v142_v22 }
  0xeb   :  { %599 = vmatpush3.xpose.msra.mxu0 %v150_v24  ;;  %605 = vmatprep.mubr.msk.f32.mxu1 %vm707_vm1, %v706_v0 }
  0xec   :  { %608 = vmatprep.subr.mxu0 %v706_v0  ;;  %604 = vmatpush3.msra.mxu1 %v219_v29 }
  0xee   :  { %601 = vmatmul.mubr.f32.vlgmr.msra.gmra.mxu0 %v148_v25 }
  0xef   :  { %610 = vmatprep.mubr.msk.f32.mxu0 %vm707_vm1, %v706_v0  ;;  %609 = vmatpush3.msra.mxu0 %v224_v27 }
 0x1aa   :  { %v293_v30 = vpop.f32.mrf.mxu1 }
 0x1ab   :  { %v368_v31 = vsel %vm367_vm2, %v293_v30, -inf }
 0x1ac   :  { %369 = vmax.xlane.f32.xlu0 %v368_v31  ;;  %v597_v32 = vpop.f32.mrf.mxu1 }
 0x1ae   :  { %v363_v33 = vpop.f32.mrf.mxu0 }
 0x1af   :  { %v371_v34 = vsel %vm367_vm2, %v363_v33, -inf }
 0x1b0   :  { %v602_v35 = vpop.f32.mrf.mxu0  ;;  %372 = vmax.xlane.f32.xlu0 %v371_v34 }
 0x235   :  { %v370_v36 = vpop.xlane.xlu0 %369 }
 0x236   :  { %v380_v37 = vsub.f32 %v293_v30, %v370_v36  ;;  %v374_v46 = vsub.f32 -inf, %v370_v36 }
 0x238   :  { %v382_v38 = vmul.f32 1.442695, %v380_v37  ;;  %v376_v47 = vmul.f32 1.442695, %v374_v46 }
 0x239   :  { %v373_v39 = vpop.xlane.xlu0 %372 }
 0x23a   :  { %v381_v40 = vsub.f32 %v363_v33, %v373_v39  ;;  %622 = vpow2.f32 %v382_v38  ;;  %v375_v48 = vsub.f32 -inf, %v373_v39 }
 0x23c   :  { %v384_v41 = vmul.f32 1.442695, %v381_v40  ;;  %v378_v49 = vmul.f32 1.442695, %v375_v48 }
 0x23e   :  { %624 = vpow2.f32 %v384_v41 }
 0x23f   :  { %626 = vpow2.f32 %v376_v47 }
 0x240   :  { %628 = vpow2.f32 %v378_v49 }
 0x247   :  { %v623_v42 = vpop.eup %622 }
 0x248   :  { %606 = vmatmul.mubr.msk.f32.vlgmr.msra.gmra.mxu1 %vm367_vm2, %v623_v42  ;;  %v388_v43 = vsel %vm367_vm2, %v623_v42, 0.0 }
 0x249   :  { %389 = vadd.xlane.f32.xlu1 %v388_v43 }
 0x24b   :  { %v625_v44 = vpop.eup %624 }
 0x24c   :  { %611 = vmatmul.mubr.msk.f32.vlgmr.msra.gmra.mxu0 %vm367_vm2, %v625_v44  ;;  %v391_v45 = vsel %vm367_vm2, %v625_v44, 0.0  ;;  %v627_v50 = vpop.eup %626 }
 0x24d   :  { %392 = vadd.xlane.f32.xlu1 %v391_v45  ;;  %v386_v52 = vmul.f32 0.0, %v627_v50  ;;  %v629_v53 = vpop.eup %628 }
 0x24e   :  { %v387_v56 = vmul.f32 0.0, %v629_v53 }
 0x2d2   :  { %v390_v51 = vpop.xlane.xlu1 %389 }
 0x2d3   :  { %v394_v54 = vadd.f32 %v390_v51, %v386_v52 }
 0x2d5   :  { %630 = vrcp.f32 %v394_v54 }
 0x2d6   :  { %v393_v55 = vpop.xlane.xlu1 %392 }
 0x2d7   :  { %v395_v57 = vadd.f32 %v393_v55, %v387_v56 }
 0x2d9   :  { %632 = vrcp.f32 %v395_v57 }
 0x2e2   :  { %v631_v60 = vpop.eup %630 }
 0x2e6   :  { %v633_v1 = vpop.eup %632 }
 0x308   :  { %v465_v58 = vpop.f32.mrf.mxu1 }
 0x309   :  { %v542_v59 = vadd.f32 %v465_v58, %v386_v52 }
 0x30a   :  { %v607_v61 = vpop.f32.mrf.mxu1 }
 0x30b   :  { %v546_v62 = vmul.f32 %v631_v60, %v542_v59 }
 0x30c   :  { %v538_v63 = vpop.f32.mrf.mxu0 }
 0x30d   :  { %548 = vst [vmem:[#allocation7] sm:$0xff] %v546_v62  ;;  %v543_v0 = vadd.f32 %v538_v63, %v387_v56 }
 0x30e   :  { %v612_v2 = vpop.f32.mrf.mxu0 }
 0x30f   :  { %v547_v3 = vmul.f32 %v633_v1, %v543_v0 }
 0x311   :  { %549 = vst [vmem:[#allocation7 + $0x8] sm:$0xff] %v547_v3 }
 0x312   :  { %685 = shalt.err (!%p682_p0)
}
 0x313   :  { %561 = dma.vmem_to_hbm [thread:$0]  %s556_s26, 256, %s764_s3, [#allocation4], %s701_s15, %s701_s15, %s702_s16  }
 0x314   :  { %698 = dma.done.wait [#allocation4], 256  }
 0x315   :  { %699 = vsyncadd [#allocation4], 4294967040 }
 0x316   :  { %565 = vsyncpa [#allocation3], 1 }
 0x317   :  { %566 = vsyncpa [#allocation6], 1 }
 0x318   :  { %567 = vsyncpa [#allocation4], 1 }

// kernel: tpu_custom_call.1
= control target key start
LH: loop header
LB: loop body
LE: loop exit
PB: predicated region body
PF: predicated region fallthrough
CT: control target
= control target key end

     0   :  { %8 = vsyncpa [#allocation3], 0  ;;  %s761_s0 = inlined_call_operand.hbm [shape: f32[2,8,16], index: 0, kind: input, shape index: {}]   ;;  %s762_s1 = inlined_call_operand.hbm [shape: f32[16,384], index: 1, kind: input, shape index: {}]   ;;  %s763_s2 = inlined_call_operand.vmem [shape: f32[1,384], index: 2, kind: input, shape index: {}]   ;;  %s764_s3 = inlined_call_operand.hbm [shape: f32[2,8,128], index: 3, kind: output, shape index: {}]  }
   0x1   :  { %9 = vsyncpa [#allocation6], 0 }
   0x2   :  { %10 = vsyncpa [#allocation4], 0  ;;  %s700_s12 = smov [#allocation2]  }
   0x3   :  { %s16_s13 = sshll.u32 %s700_s12, 4  ;;  %s17_s13 = int_to_ptr.vmem [resolvable:$true] %s16_s13 }
   0x4   :  { %s642_s14 = scalar_lea.vmem %s17_s13, 256  ;;  %p647_p1 = scmp.lt.s32.totalorder %s17_s13, %s17_s13 }
   0x5   :  { %p643_p0 = scmp.ne.s32.totalorder %s17_s13, %s642_s14  ;;  %p648_p2 = scmp.lt.s32.totalorder %s642_s14, %s642_s14 }
   0x7   :  { %p649_p3 = por %p648_p2, %p647_p1 }
   0x9   :  { %p650_p4 = pnand %p649_p3, %p643_p0 }
   0xb   :  { %653 = shalt.err (!%p650_p4)
}
   0xc   :  { %s701_s15 = smov 128   ;;  %s702_s16 = smov 8  }
   0xd   :  { %22 = dma.hbm_to_vmem [thread:$0]  %s761_s0, 256, %s17_s13, [#allocation3], %s701_s15, %s701_s15, %s702_s16  }
   0xe   :  { %s703_s19 = smov [#allocation5]  }
   0xf   :  { %s28_s20 = sshll.u32 %s703_s19, 4  ;;  %s29_s20 = int_to_ptr.vmem [resolvable:$true] %s28_s20 }
  0x10   :  { %s662_s21 = scalar_lea.vmem %s29_s20, 768  ;;  %p667_p6 = scmp.lt.s32.totalorder %s29_s20, %s29_s20 }
  0x11   :  { %p663_p5 = scmp.ne.s32.totalorder %s29_s20, %s662_s21  ;;  %p668_p7 = scmp.lt.s32.totalorder %s662_s21, %s662_s21 }
  0x13   :  { %p669_p8 = por %p668_p7, %p667_p6 }
  0x15   :  { %p670_p9 = pnand %p669_p8, %p663_p5 }
  0x17   :  { %673 = shalt.err (!%p670_p9)
}
  0x18   :  { %s704_s22 = smov 384   ;;  %s705_s23 = smov 24  }
  0x19   :  { %34 = dma.hbm_to_vmem [thread:$0]  %s762_s1, 768, %s29_s20, [#allocation6], %s704_s22, %s704_s22, %s705_s23  }
  0x1a   :  { %694 = dma.done.wait [#allocation3], 256  }
  0x1b   :  { %695 = vsyncadd [#allocation3], 4294967040 }
  0x1c   :  { %696 = dma.done.wait [#allocation6], 768  }
  0x1d   :  { %697 = vsyncadd [#allocation6], 4294966528  ;;  %v706_v0 = vmov 0.0   ;;  %v49_v1 = vld [vmem:[#allocation5 + $0x20] sm:$0xff]  ;;  %v48_v2 = vld [vmem:[#allocation5 + $0x18] sm:$0xff]  ;;  %vm68_vm0 = vcmask 130048   ;;  %v53_v9 = vlaneseq }
  0x1e   :  { %139 = vmatprep.mubr.f32.mxu0 %v706_v0  ;;  %v46_v3 = vld [vmem:[#allocation5 + $0x8] sm:$0xff]  ;;  %103 = vmatprep.subr.mxu0 %v49_v1  ;;  %v45_v4 = vld [vmem:[#allocation5] sm:$0xff]  ;;  %v43_v5 = vld [vmem:[#allocation2] sm:$0xff]  ;;  %vm707_vm1 = vmmov 0   ;;  %vm367_vm2 = vcmask 64512  }
  0x1f   :  { %104 = vmatpush1.msra.mxu0 %v48_v2  ;;  %590 = vmatprep.mubr.msk.f32.mxu1 %vm68_vm0, %v43_v5  ;;  %v44_v6 = vld [vmem:[#allocation2 + $0x8] sm:$0xff]  ;;  %v50_v7 = vld [vmem:[#allocation5 + $0x28] sm:$0xff]  ;;  %v47_v8 = vld [vmem:[#allocation5 + $0x10] sm:$0xff]  ;;  %v54_v10 = vshrl.u32 %v53_v9, 7 }
  0x20   :  { %105 = vmatprep.subr.mxu0 %v46_v3  ;;  %586 = vmatprep.subr.mxu1 %v50_v7  ;;  %v51_v12 = vld [vmem:[%s763_s2] sm:$0x7]  ;;  %s708_s2 = smov [#allocation7]  }
  0x21   :  { %106 = vmatpush1.msra.mxu0 %v45_v4  ;;  %587 = vmatpush3.msra.mxu1 %v50_v7  ;;  %v63_v11 = vsub.s32 2, %v54_v10  ;;  %v59_v14 = vsub.s32 1, %v54_v10  ;;  %v55_v15 = vsub.s32 0, %v54_v10  ;;  %s555_s26 = sshll.u32 %s708_s2, 4  ;;  %s556_s26 = int_to_ptr.vmem [resolvable:$true] %s555_s26 }
  0x22   :  { %568 = vmatmul.mubr.msk.f32.vlgmr.msra.gmra.mxu0 %vm68_vm0, %v43_v5  ;;  %598 = vmatprep.subr.mxu0 %v706_v0  ;;  %s674_s27 = scalar_lea.vmem %s556_s26, 256  ;;  %p679_p11 = scmp.lt.s32.totalorder %s556_s26, %s556_s26 }
  0x23   :  { %145 = vmatprep.mubr.f32.mxu0 %v706_v0  ;;  %588 = vmatprep.subr.mxu1 %v47_v8  ;;  %v64_v13 = vrot.slane %v51_v12, %v63_v11  ;;  %v60_v16 = vrot.slane %v51_v12, %v59_v14  ;;  %v56_v18 = vrot.slane %v51_v12, %v55_v15  ;;  %p675_p10 = scmp.ne.s32.totalorder %s556_s26, %s674_s27  ;;  %p680_p12 = scmp.lt.s32.totalorder %s674_s27, %s674_s27 }
  0x24   :  { %589 = vmatpush3.msra.mxu1 %v47_v8 }
  0x25   :  { %591 = vmatmul.mubr.msk.f32.vlgmr.msra.gmra.mxu1 %vm68_vm0, %v44_v6  ;;  %593 = vmatprep.subr.mxu1 %v706_v0  ;;  %p681_p13 = por %p680_p12, %p679_p11 }
  0x26   :  { %569 = vmatmul.mubr.msk.f32.gmra.mxu0 %vm68_vm0, %v44_v6  ;;  %595 = vmatprep.mubr.msk.f32.mxu1 %vm707_vm1, %v706_v0 }
  0x27   :  { %600 = vmatprep.mubr.msk.f32.mxu0 %vm707_vm1, %v706_v0  ;;  %p682_p0 = pnand %p681_p13, %p675_p10 }
  0xe2   :  { %v141_v17 = vpop.f32.mrf.mxu0 }
  0xe3   :  { %v142_v22 = vadd.f32 %v141_v17, %v56_v18 }
  0xe4   :  { %v143_v19 = vpop.f32.mrf.mxu0 }
  0xe5   :  { %v144_v20 = vadd.f32 %v143_v19, %v60_v16  ;;  %v592_v26 = vpop.f32.mrf.mxu1 }
  0xe6   :  { %v147_v21 = vpop.f32.mrf.mxu0  ;;  %v224_v27 = vadd.f32 %v592_v26, %v64_v13 }
  0xe7   :  { %594 = vmatpush3.xpose.msra.mxu1 %v144_v20  ;;  %v148_v25 = vadd.f32 %v147_v21, %v56_v18  ;;  %v218_v28 = vpop.f32.mrf.mxu1 }
  0xe8   :  { %v149_v23 = vpop.f32.mrf.mxu0  ;;  %603 = vmatprep.subr.mxu1 %v706_v0  ;;  %v219_v29 = vadd.f32 %v218_v28, %v64_v13 }
  0xe9   :  { %v150_v24 = vadd.f32 %v149_v23, %v60_v16 }
  0xea   :  { %596 = vmatmul.mubr.f32.vlgmr.msra.gmra.mxu1 %v142_v22 }
  0xeb   :  { %599 = vmatpush3.xpose.msra.mxu0 %v150_v24  ;;  %605 = vmatprep.mubr.msk.f32.mxu1 %vm707_vm1, %v706_v0 }
  0xec   :  { %608 = vmatprep.subr.mxu0 %v706_v0  ;;  %604 = vmatpush3.msra.mxu1 %v219_v29 }
  0xee   :  { %601 = vmatmul.mubr.f32.vlgmr.msra.gmra.mxu0 %v148_v25 }
  0xef   :  { %610 = vmatprep.mubr.msk.f32.mxu0 %vm707_vm1, %v706_v0  ;;  %609 = vmatpush3.msra.mxu0 %v224_v27 }
 0x1aa   :  { %v293_v30 = vpop.f32.mrf.mxu1 }
 0x1ab   :  { %v368_v31 = vsel %vm367_vm2, %v293_v30, -inf }
 0x1ac   :  { %369 = vmax.xlane.f32.xlu0 %v368_v31  ;;  %v597_v32 = vpop.f32.mrf.mxu1 }
 0x1ae   :  { %v363_v33 = vpop.f32.mrf.mxu0 }
 0x1af   :  { %v371_v34 = vsel %vm367_vm2, %v363_v33, -inf }
 0x1b0   :  { %v602_v35 = vpop.f32.mrf.mxu0  ;;  %372 = vmax.xlane.f32.xlu0 %v371_v34 }
 0x235   :  { %v370_v36 = vpop.xlane.xlu0 %369 }
 0x236   :  { %v380_v37 = vsub.f32 %v293_v30, %v370_v36  ;;  %v374_v46 = vsub.f32 -inf, %v370_v36 }
 0x238   :  { %v382_v38 = vmul.f32 1.442695, %v380_v37  ;;  %v376_v47 = vmul.f32 1.442695, %v374_v46 }
 0x239   :  { %v373_v39 = vpop.xlane.xlu0 %372 }
 0x23a   :  { %v381_v40 = vsub.f32 %v363_v33, %v373_v39  ;;  %622 = vpow2.f32 %v382_v38  ;;  %v375_v48 = vsub.f32 -inf, %v373_v39 }
 0x23c   :  { %v384_v41 = vmul.f32 1.442695, %v381_v40  ;;  %v378_v49 = vmul.f32 1.442695, %v375_v48 }
 0x23e   :  { %624 = vpow2.f32 %v384_v41 }
 0x23f   :  { %626 = vpow2.f32 %v376_v47 }
 0x240   :  { %628 = vpow2.f32 %v378_v49 }
 0x247   :  { %v623_v42 = vpop.eup %622 }
 0x248   :  { %606 = vmatmul.mubr.msk.f32.vlgmr.msra.gmra.mxu1 %vm367_vm2, %v623_v42  ;;  %v388_v43 = vsel %vm367_vm2, %v623_v42, 0.0 }
 0x249   :  { %389 = vadd.xlane.f32.xlu1 %v388_v43 }
 0x24b   :  { %v625_v44 = vpop.eup %624 }
 0x24c   :  { %611 = vmatmul.mubr.msk.f32.vlgmr.msra.gmra.mxu0 %vm367_vm2, %v625_v44  ;;  %v391_v45 = vsel %vm367_vm2, %v625_v44, 0.0  ;;  %v627_v50 = vpop.eup %626 }
 0x24d   :  { %392 = vadd.xlane.f32.xlu1 %v391_v45  ;;  %v386_v52 = vmul.f32 0.0, %v627_v50  ;;  %v629_v53 = vpop.eup %628 }
 0x24e   :  { %v387_v56 = vmul.f32 0.0, %v629_v53 }
 0x2d2   :  { %v390_v51 = vpop.xlane.xlu1 %389 }
 0x2d3   :  { %v394_v54 = vadd.f32 %v390_v51, %v386_v52 }
 0x2d5   :  { %630 = vrcp.f32 %v394_v54 }
 0x2d6   :  { %v393_v55 = vpop.xlane.xlu1 %392 }
 0x2d7   :  { %v395_v57 = vadd.f32 %v393_v55, %v387_v56 }
 0x2d9   :  { %632 = vrcp.f32 %v395_v57 }
 0x2e2   :  { %v631_v60 = vpop.eup %630 }
 0x2e6   :  { %v633_v1 = vpop.eup %632 }
 0x308   :  { %v465_v58 = vpop.f32.mrf.mxu1 }
 0x309   :  { %v542_v59 = vadd.f32 %v465_v58, %v386_v52 }
 0x30a   :  { %v607_v61 = vpop.f32.mrf.mxu1 }
 0x30b   :  { %v546_v62 = vmul.f32 %v631_v60, %v542_v59 }
 0x30c   :  { %v538_v63 = vpop.f32.mrf.mxu0 }
 0x30d   :  { %548 = vst [vmem:[#allocation7] sm:$0xff] %v546_v62  ;;  %v543_v0 = vadd.f32 %v538_v63, %v387_v56 }
 0x30e   :  { %v612_v2 = vpop.f32.mrf.mxu0 }
 0x30f   :  { %v547_v3 = vmul.f32 %v633_v1, %v543_v0 }
 0x311   :  { %549 = vst [vmem:[#allocation7 + $0x8] sm:$0xff] %v547_v3 }
 0x312   :  { %685 = shalt.err (!%p682_p0)
}
 0x313   :  { %561 = dma.vmem_to_hbm [thread:$0]  %s556_s26, 256, %s764_s3, [#allocation4], %s701_s15, %s701_s15, %s702_s16  }
 0x314   :  { %698 = dma.done.wait [#allocation4], 256  }
 0x315   :  { %699 = vsyncadd [#allocation4], 4294967040 }
 0x316   :  { %565 = vsyncpa [#allocation3], 1 }
 0x317   :  { %566 = vsyncpa [#allocation6], 1 }
 0x318   :  { %567 = vsyncpa [#allocation4], 1 }

</bundles_post_ra>
